<compile_context>
chip_gen: v7x
topology: tpu7x:2x2x1
jax: 0.10.0
libtpu: 0.0.40
codegen_flags: <defaults>
</compile_context>

<pallas_src>
import math

import jax
import jax.numpy as jnp
from jax.experimental import pallas as pl
from jax.experimental.pallas import tpu as pltpu


def _cdiv(a, b):
    return -(-a // b)


def _round_up(x, m):
    return _cdiv(x, m) * m


# ----------------------------------------------------------------------------
# Tiling heuristic
# ----------------------------------------------------------------------------
_VMEM_BUDGET = 24 * 1024 * 1024   # working-set target (< 32 MiB scoped limit)
_STEP_BYTES_TARGET = 1 << 20      # aim for >= ~1 MiB of input DMA per grid step
_MAX_BATCH_FOLD = 32              # bound for the static per-sample unroll


def _pick_tiling(n, hw, cs, x_itemsizes, max_lane_tile=None):
    # per-lane, per-batch-sample byte cost
    in_bytes = sum(c * isz + 4 for c, isz in zip(cs, x_itemsizes))   # logits + i32 tgt
    padded_c = sum(_round_up(c, 8) for c in cs)                      # sublane padding
    per_lane = 2 * in_bytes + 5 * 4 * padded_c                       # dbl-buf in + f32 temps

    # wide-class (21-way) tasks capped at 32768 so the f32 temporaries stay
    # comfortably inside v7x's 32 MiB scoped VMEM; narrow tasks can go to 65536
    tm_cap = 65536 if padded_c <= 8 else 32768
    if max_lane_tile is not None:
        tm_cap = min(tm_cap, max_lane_tile)
    tm_max = min(tm_cap, max(128, (_VMEM_BUDGET // per_lane) // 128 * 128))

    if hw <= tm_max:
        tm, n_blocks = hw, 1                       # whole row: no ragged lanes
    else:
        n_blocks = _cdiv(hw, tm_max)
        tm = _round_up(_cdiv(hw, n_blocks), 128)   # balanced, 128-aligned tiles
        n_blocks = _cdiv(hw, tm)

    # fold batch samples per grid step when H*W is small (amortise per-step
    # overhead), but keep >=2 "parallel" batch tiles when possible so v7x's
    # second TensorCore has work.
    bt = min(n,
             _MAX_BATCH_FOLD,
             max(1, _VMEM_BUDGET // (tm * per_lane)),
             max(1, _cdiv(_STEP_BYTES_TARGET, tm * in_bytes)))
    if n >= 2:
        bt = min(bt, n // 2)
    bt = max(bt, 1)
    while n % bt:                                  # bt must divide n (no ragged batch)
        bt -= 1
    return bt, tm, n_blocks


# ----------------------------------------------------------------------------
# Pallas kernel: fused multi-task weighted-CE partial sums (transposed layout)
# ----------------------------------------------------------------------------
def _make_wce_kernel(cs, hw, tm, bt):
    """Per task k the kernel sees:
         x_ref_k : (bt, C_k, tm)  logits (native dtype, upcast to f32 in-kernel)
         t_ref_k : (bt, 1,  tm)   int32 targets
         w_ref_k : (C_k, 1)       f32 per-class weights
       out_ref   : (1, 2*T, 128)  f32, written only on the last lane tile:
                   row 2k   = sum_i w_k[y_i] * (logsumexp(x_i) - x_i[y_i])
                   row 2k+1 = sum_i w_k[y_i]
       acc_ref   : (2*T, tm) f32 VMEM scratch accumulator.
    """
    n_tasks = len(cs)
    ragged = (hw % tm) != 0

    def kernel(*refs):
        in_refs = refs[:3 * n_tasks]
        out_ref = refs[3 * n_tasks]
        acc_ref = refs[3 * n_tasks + 1]

        j = pl.program_id(1)
        last_j = pl.num_programs(1) - 1

        @pl.when(j == 0)
        def _init():
            acc_ref[...] = jnp.zeros_like(acc_ref)

        rows = []
        for k in range(n_tasks):
            x_ref, t_ref, w_ref = in_refs[3 * k:3 * k + 3]
            c = cs[k]
            w = w_ref[...]                                            # (C, 1)
            cls = jax.lax.broadcasted_iota(jnp.int32, (c, tm), 0)     # hoisted
            num = jnp.zeros((1, tm), jnp.float32)
            den = jnp.zeros((1, tm), jnp.float32)
            for b in range(bt):                                       # small static unroll
                x = x_ref[b].astype(jnp.float32)                      # (C, TM)
                t = t_ref[b]                                          # (1, TM)
                onehot = (cls == t).astype(jnp.float32)               # (C, TM)
                # numerically stable log-sum-exp over classes (sublane reduce)
                m = jnp.max(x, axis=0, keepdims=True)                 # (1, TM)
                lse = jnp.log(jnp.sum(jnp.exp(x - m), axis=0, keepdims=True)) + m
                # fused weighted selection: w[y] and w[y]*x[y] in one pass
                wsel = onehot * w                                     # (C, TM)
                w_y = jnp.sum(wsel, axis=0, keepdims=True)            # (1, TM)
                wx_y = jnp.sum(wsel * x, axis=0, keepdims=True)       # (1, TM)
                num = num + (w_y * lse - wx_y)
                den = den + w_y
            rows.append(num)
            rows.append(den)

        # sublane concat instead of iota+where accumulate (VPU-cheaper)
        upd = jnp.concatenate(rows, axis=0)                           # (2T, TM)

        if ragged:
            # only the LAST lane tile has out-of-range lanes -> gate the mask
            @pl.when(j == last_j)
            def _acc_masked():
                lane = jax.lax.broadcasted_iota(jnp.int32, (1, tm), 1)
                valid = (j * tm + lane) < hw
                acc_ref[...] += jnp.where(valid, upd, 0.0)

            @pl.when(j != last_j)
            def _acc_full():
                acc_ref[...] += upd
        else:
            acc_ref[...] += upd

        # finish the lane reduction in-kernel; write one tiny lane-dense block
        @pl.when(j == last_j)
        def _finish():
            sums = jnp.sum(acc_ref[...], axis=1, keepdims=True)       # (2T, 1)
            out_ref[0] = jnp.broadcast_to(sums, (2 * n_tasks, 128))

    return kernel


# ----------------------------------------------------------------------------
# Host wrappers
# ----------------------------------------------------------------------------
def weighted_cross_entropy_multi(tasks, *, max_lane_tile=None):
    """Fused F.cross_entropy(x, y, weight=w, reduction='mean') for one or more
    tasks that share (N, H, W).  tasks = [(logits_nchw, targets_nhw, w), ...].
    Returns one weighted-mean CE loss per task.

    NOTE: if every pixel of a task lands on a zero-weight class the denominator
    is 0 and the loss is NaN -- this matches torch F.cross_entropy semantics.
    """
    n, _, h0, w0 = tasks[0][0].shape
    hw = h0 * w0
    for logits, targets, _ in tasks:
        assert logits.shape[0] == n and logits.shape[2] * logits.shape[3] == hw
        assert targets.shape == (n, logits.shape[2], logits.shape[3])

    cs = [int(t[0].shape[1]) for t in tasks]
    itemsizes = [jnp.dtype(t[0].dtype).itemsize for t in tasks]
    bt, tm, n_blocks = _pick_tiling(n, hw, cs, itemsizes, max_lane_tile)
    n_tasks = len(tasks)
    t2 = 2 * n_tasks

    args, in_specs = [], []
    for (logits, targets, weights), c in zip(tasks, cs):
        # free contiguous reshapes; logits stay in their native dtype (bf16 OK)
        args.append(logits.reshape(n, c, hw))
        args.append(targets.reshape(n, 1, hw).astype(jnp.int32))
        args.append(weights.astype(jnp.float32).reshape(c, 1))
        in_specs.append(pl.BlockSpec((bt, c, tm), lambda bi, j: (bi, 0, j)))
        in_specs.append(pl.BlockSpec((bt, 1, tm), lambda bi, j: (bi, 0, j)))
        in_specs.append(pl.BlockSpec((c, 1), lambda bi, j: (0, 0)))

    kernel = _make_wce_kernel(tuple(cs), hw, tm, bt)

    partials = pl.pallas_call(
        kernel,
        out_shape=jax.ShapeDtypeStruct((n // bt, t2, 128), jnp.float32),
        grid=(n // bt, n_blocks),
        in_specs=in_specs,
        # resident per-batch-tile accumulator target; written on last tile only
        out_specs=pl.BlockSpec((1, t2, 128), lambda bi, j: (bi, 0, 0)),
        scratch_shapes=[pltpu.VMEM((t2, tm), jnp.float32)],
        compiler_params=pltpu.CompilerParams(
            dimension_semantics=("parallel", "arbitrary"),
            vmem_limit_bytes=32 * 1024 * 1024),
    )(*args)

    sums = jnp.sum(partials[:, :, 0], axis=0)        # (2T,) tiny XLA reduce
    return [sums[2 * k] / sums[2 * k + 1] for k in range(n_tasks)]


def weighted_cross_entropy(logits_nchw, targets_nhw, class_weights):
    (loss,) = weighted_cross_entropy_multi([(logits_nchw, targets_nhw, class_weights)])
    return loss


# ----------------------------------------------------------------------------
# Fused forward (all three tasks + lambda combine) under one jit.
# ----------------------------------------------------------------------------
@jax.jit
def _fused_forward(backbone_output, carbon_alpha_output, amino_acid_output,
                   backbone_target, carbon_alpha_target, amino_acid_target,
                   backbone_w, carbon_alpha_w, amino_acid_w, lam):
    # Fuse the two 4-class tasks into ONE pallas_call when their shapes match
    # (saves a pipeline prologue/epilogue, interleaves their DMAs, no XLA
    # concat); the 21-class task keeps its own call with its own lane tile.
    if (backbone_output.shape[0] == carbon_alpha_output.shape[0]
            and backbone_output.shape[2:] == carbon_alpha_output.shape[2:]):
        backbone_loss, carbon_alpha_loss = weighted_cross_entropy_multi(
            [(backbone_output, backbone_target, backbone_w),
             (carbon_alpha_output, carbon_alpha_target, carbon_alpha_w)])
    else:
        backbone_loss = weighted_cross_entropy(backbone_output, backbone_target,
                                               backbone_w)
        carbon_alpha_loss = weighted_cross_entropy(carbon_alpha_output,
                                                   carbon_alpha_target,
                                                   carbon_alpha_w)
    amino_acid_loss = weighted_cross_entropy(amino_acid_output, amino_acid_target,
                                             amino_acid_w)
    total = (lam[0] * backbone_loss + lam[1] * carbon_alpha_loss
             + lam[2] * amino_acid_loss)
    return total, backbone_loss, carbon_alpha_loss, amino_acid_loss


# ----------------------------------------------------------------------------
# WeightedMultiTaskLoss (forward only)
# ----------------------------------------------------------------------------
class WeightedMultiTaskLoss:
    def __init__(self,
                 backbone_weights=(0.03, 0.001, 0.3, 1),
                 carbon_alpha_weights=(0.01, 0.001, 0.1, 1.0),
                 amino_acid_weights=(0.001, 1.0, 1.8, 1.1, 1.1, 1.3, 1.0, 1.6,
                                     1.1, 1.1, 0.9, 1.7, 1.2, 1.2, 1.3, 1.1,
                                     1.0, 1.1, 1.0, 2.2, 1.4),
                 label_smoothing=0.1):
        self.backbone_weights = jnp.asarray(backbone_weights, jnp.float32)
        self.carbon_alpha_weights = jnp.asarray(carbon_alpha_weights, jnp.float32)
        self.amino_acid_weights = jnp.asarray(amino_acid_weights, jnp.float32)
        # stored but unused in forward -- matches the PyTorch module exactly
        self.label_smoothing = label_smoothing

    @staticmethod
    def cosine_transition(epoch, start_epoch, end_epoch):
        if epoch <= start_epoch:
            return 0.0
        elif epoch >= end_epoch:
            return 1.0
        progress = (epoch - start_epoch) / (end_epoch - start_epoch)
        return 0.5 * (1 - math.cos(math.pi * progress))

    def forward(self, outputs, targets, epoch, num_epochs):
        backbone_output, carbon_alpha_output, amino_acid_output = outputs
        backbone_target, carbon_alpha_target, amino_acid_target = targets

        start_lambda_b, start_lambda_c, start_lambda_a = 0.6, 0.25, 0.15
        target_lambda_b, target_lambda_c, target_lambda_a = 0.25, 0.4, 0.35
        transition_epoch = 25
        progress = self.cosine_transition(epoch, 0, transition_epoch)
        lambda_b = start_lambda_b + (target_lambda_b - start_lambda_b) * progress
        lambda_c = start_lambda_c + (target_lambda_c - start_lambda_c) * progress
        lambda_a = start_lambda_a + (target_lambda_a - start_lambda_a) * progress
        total_lambda = lambda_b + lambda_c + lambda_a
        lambda_b /= total_lambda
        lambda_c /= total_lambda
        lambda_a /= total_lambda

        lam = jnp.asarray([lambda_b, lambda_c, lambda_a], jnp.float32)
        total_loss, backbone_loss, carbon_alpha_loss, amino_acid_loss = _fused_forward(
            backbone_output, carbon_alpha_output, amino_acid_output,
            backbone_target, carbon_alpha_target, amino_acid_target,
            self.backbone_weights, self.carbon_alpha_weights,
            self.amino_acid_weights, lam)

        # Metrics hold device scalars (no blocking host syncs in the hot path).
        return total_loss, {
            'total_loss': total_loss,
            'backbone_loss': backbone_loss,
            'carbon_alpha_loss': carbon_alpha_loss,
            'amino_acid_loss': amino_acid_loss,
            'lambda_b': lambda_b,
            'lambda_c': lambda_c,
            'lambda_a': lambda_a,
        }

    __call__ = forward


# ----------------------------------------------------------------------------
# Pure-JAX reference for correctness check
# ----------------------------------------------------------------------------
def _ref_weighted_ce(logits_nchw, targets, class_weights):
    c = logits_nchw.shape[1]
    x = jnp.moveaxis(logits_nchw, 1, -1).reshape(-1, c).astype(jnp.float32)
    t = targets.reshape(-1)
    logp = jax.nn.log_softmax(x, axis=-1)
    nll = -jnp.take_along_axis(logp, t[:, None], axis=-1)[:, 0]
    w = class_weights[t]
    return jnp.sum(w * nll) / jnp.sum(w)


if __name__ == "__main__":
    key = jax.random.PRNGKey(0)
    k = jax.random.split(key, 8)

    N, H, W = 2, 16, 16
    CB, CC, CA = 4, 4, 21   # backbone / carbon-alpha / amino-acid class counts

    backbone_output = jax.random.normal(k[0], (N, CB, H, W), jnp.float32)
    carbon_alpha_output = jax.random.normal(k[1], (N, CC, H, W), jnp.float32)
    amino_acid_output = jax.random.normal(k[2], (N, CA, H, W), jnp.float32)

    backbone_target = jax.random.randint(k[3], (N, H, W), 0, CB, jnp.int32)
    carbon_alpha_target = jax.random.randint(k[4], (N, H, W), 0, CC, jnp.int32)
    amino_acid_target = jax.random.randint(k[5], (N, H, W), 0, CA, jnp.int32)

    loss_fn = WeightedMultiTaskLoss()
    total_loss, metrics = loss_fn(
        (backbone_output, carbon_alpha_output, amino_acid_output),
        (backbone_target, carbon_alpha_target, amino_acid_target),
        epoch=10, num_epochs=50)
    jax.block_until_ready(total_loss)

    # reference check (fused 2-task call + separate 21-class call)
    rb = _ref_weighted_ce(backbone_output, backbone_target, loss_fn.backbone_weights)
    rc = _ref_weighted_ce(carbon_alpha_output, carbon_alpha_target,
                          loss_fn.carbon_alpha_weights)
    ra = _ref_weighted_ce(amino_acid_output, amino_acid_target,
                          loss_fn.amino_acid_weights)
    ref_total = (metrics['lambda_b'] * rb + metrics['lambda_c'] * rc
                 + metrics['lambda_a'] * ra)
    assert abs(float(total_loss) - float(ref_total)) < 1e-4, (
        float(total_loss), float(ref_total))
    assert abs(float(metrics['backbone_loss']) - float(rb)) < 1e-4
    assert abs(float(metrics['carbon_alpha_loss']) - float(rc)) < 1e-4
    assert abs(float(metrics['amino_acid_loss']) - float(ra)) < 1e-4

    # extra coverage: multi-block ragged lane tiles + batch folding + bf16 logits
    N2, C2, H2, W2 = 4, 4, 10, 30          # hw = 300 (not a multiple of 128)
    xr = jax.random.normal(k[6], (N2, C2, H2, W2), jnp.float32).astype(jnp.bfloat16)
    tr = jax.random.randint(k[7], (N2, H2, W2), 0, C2, jnp.int32)
    wr = jnp.asarray([0.5, 1.0, 2.0, 0.25], jnp.float32)
    (got,) = weighted_cross_entropy_multi([(xr, tr, wr)], max_lane_tile=128)
    want = _ref_weighted_ce(xr.astype(jnp.float32), tr, wr)
    assert abs(float(got) - float(want)) < 2e-3, (float(got), float(want))

    print("KERNEL_OK")
</pallas_src>

<mosaic_0001>
module attributes {stable_mosaic.version = 11 : i64} {
  func.func @kernel(%arg0: i32, %arg1: i32, %arg2: memref<1x4x256xf32, #tpu.memory_space<vmem>>, %arg3: memref<1x1x256xi32, #tpu.memory_space<vmem>>, %arg4: memref<4x1xf32, #tpu.memory_space<vmem>>, %arg5: memref<1x4x256xf32, #tpu.memory_space<vmem>>, %arg6: memref<1x1x256xi32, #tpu.memory_space<vmem>>, %arg7: memref<4x1xf32, #tpu.memory_space<vmem>>, %arg8: memref<1x4x128xf32, #tpu.memory_space<vmem>>, %arg9: memref<4x256xf32, #tpu.memory_space<vmem>>) attributes {dimension_semantics = [#tpu.dimension_semantics<parallel>, #tpu.dimension_semantics<arbitrary>], iteration_bounds = array<i64: 2, 1>, scalar_prefetch = 0 : i64, scratch_operands = 1 : i64, tpu.core_type = #tpu.core_type<tc>, window_params = [{transform_indices = @transform_0, window_bounds = array<i64: 1, 4, 256>}, {transform_indices = @transform_1, window_bounds = array<i64: 1, 1, 256>}, {pipeline_mode = #tpu.pipeline_mode<synchronous>, transform_indices = @transform_2, window_bounds = array<i64: 4, 1>}, {transform_indices = @transform_3, window_bounds = array<i64: 1, 4, 256>}, {transform_indices = @transform_4, window_bounds = array<i64: 1, 1, 256>}, {pipeline_mode = #tpu.pipeline_mode<synchronous>, transform_indices = @transform_5, window_bounds = array<i64: 4, 1>}, {transform_indices = @transform_6, window_bounds = array<i64: 1, 4, 128>}]} {
    %c0_i32 = arith.constant 0 : i32
    %0 = arith.cmpi eq, %arg1, %c0_i32 : i32
    %1 = arith.extui %0 : i1 to i32
    %c0_i32_0 = arith.constant 0 : i32
    %2 = arith.cmpi ne, %1, %c0_i32_0 : i32
    scf.if %2 {
      %cst_33 = arith.constant 0.000000e+00 : f32
      %74 = vector.broadcast %cst_33 : f32 to vector<4x256xf32>
      %c0_34 = arith.constant 0 : index
      %c0_35 = arith.constant 0 : index
      %75 = vector.load %arg9[%c0_34, %c0_35] : memref<4x256xf32, #tpu.memory_space<vmem>>, vector<4x256xf32>
      tpu.vector_store %arg9[%c0_34, %c0_35], %74 {strides = array<i32>} : memref<4x256xf32, #tpu.memory_space<vmem>>, vector<4x256xf32>,
    } else {
    }
    %c0 = arith.constant 0 : index
    %c0_1 = arith.constant 0 : index
    %3 = vector.load %arg4[%c0, %c0_1] : memref<4x1xf32, #tpu.memory_space<vmem>>, vector<4x1xf32>
    %4 = tpu.iota {dimensions = array<i32: 0>} : vector<4x256xi32>
    %cst = arith.constant 0.000000e+00 : f32
    %5 = vector.broadcast %cst : f32 to vector<1x256xf32>
    %cst_2 = arith.constant 0.000000e+00 : f32
    %6 = vector.broadcast %cst_2 : f32 to vector<1x256xf32>
    %c0_3 = arith.constant 0 : index
    %c0_4 = arith.constant 0 : index
    %c0_5 = arith.constant 0 : index
    %7 = vector.load %arg2[%c0_3, %c0_4, %c0_5] : memref<1x4x256xf32, #tpu.memory_space<vmem>>, vector<1x4x256xf32>
    %8 = vector.shape_cast %7 : vector<1x4x256xf32> to vector<4x256xf32>
    %c0_6 = arith.constant 0 : index
    %c0_7 = arith.constant 0 : index
    %c0_8 = arith.constant 0 : index
    %9 = vector.load %arg3[%c0_6, %c0_7, %c0_8] : memref<1x1x256xi32, #tpu.memory_space<vmem>>, vector<1x1x256xi32>
    %10 = vector.shape_cast %9 : vector<1x1x256xi32> to vector<1x256xi32>
    %11 = vector.broadcast %10 : vector<1x256xi32> to vector<4x256xi32>
    %12 = arith.cmpi eq, %4, %11 : vector<4x256xi32>
    %13 = arith.extui %12 : vector<4x256xi1> to vector<4x256xi32>
    %14 = arith.sitofp %13 : vector<4x256xi32> to vector<4x256xf32>
    %cst_9 = arith.constant dense<0xFF800000> : vector<256xf32>
    %15 = vector.multi_reduction <maximumf>, %8, %cst_9 [0] : vector<4x256xf32> to vector<256xf32>
    %16 = vector.shape_cast %15 : vector<256xf32> to vector<1x256xf32>
    %17 = vector.broadcast %16 : vector<1x256xf32> to vector<4x256xf32>
    %18 = arith.subf %8, %17 : vector<4x256xf32>
    %19 = math.exp %18 : vector<4x256xf32>
    %cst_10 = arith.constant dense<0.000000e+00> : vector<256xf32>
    %20 = vector.multi_reduction <add>, %19, %cst_10 [0] : vector<4x256xf32> to vector<256xf32>
    %21 = vector.shape_cast %20 : vector<256xf32> to vector<1x256xf32>
    %22 = math.log %21 : vector<1x256xf32>
    %23 = arith.addf %22, %16 : vector<1x256xf32>
    %24 = vector.broadcast %3 : vector<4x1xf32> to vector<4x256xf32>
    %25 = arith.mulf %14, %24 : vector<4x256xf32>
    %cst_11 = arith.constant dense<0.000000e+00> : vector<256xf32>
    %26 = vector.multi_reduction <add>, %25, %cst_11 [0] : vector<4x256xf32> to vector<256xf32>
    %27 = vector.shape_cast %26 : vector<256xf32> to vector<1x256xf32>
    %28 = arith.mulf %25, %8 : vector<4x256xf32>
    %cst_12 = arith.constant dense<0.000000e+00> : vector<256xf32>
    %29 = vector.multi_reduction <add>, %28, %cst_12 [0] : vector<4x256xf32> to vector<256xf32>
    %30 = vector.shape_cast %29 : vector<256xf32> to vector<1x256xf32>
    %31 = arith.mulf %27, %23 : vector<1x256xf32>
    %32 = arith.subf %31, %30 : vector<1x256xf32>
    %33 = arith.addf %5, %32 : vector<1x256xf32>
    %34 = arith.addf %6, %27 : vector<1x256xf32>
    %c0_13 = arith.constant 0 : index
    %c0_14 = arith.constant 0 : index
    %35 = vector.load %arg7[%c0_13, %c0_14] : memref<4x1xf32, #tpu.memory_space<vmem>>, vector<4x1xf32>
    %36 = tpu.iota {dimensions = array<i32: 0>} : vector<4x256xi32>
    %cst_15 = arith.constant 0.000000e+00 : f32
    %37 = vector.broadcast %cst_15 : f32 to vector<1x256xf32>
    %cst_16 = arith.constant 0.000000e+00 : f32
    %38 = vector.broadcast %cst_16 : f32 to vector<1x256xf32>
    %c0_17 = arith.constant 0 : index
    %c0_18 = arith.constant 0 : index
    %c0_19 = arith.constant 0 : index
    %39 = vector.load %arg5[%c0_17, %c0_18, %c0_19] : memref<1x4x256xf32, #tpu.memory_space<vmem>>, vector<1x4x256xf32>
    %40 = vector.shape_cast %39 : vector<1x4x256xf32> to vector<4x256xf32>
    %c0_20 = arith.constant 0 : index
    %c0_21 = arith.constant 0 : index
    %c0_22 = arith.constant 0 : index
    %41 = vector.load %arg6[%c0_20, %c0_21, %c0_22] : memref<1x1x256xi32, #tpu.memory_space<vmem>>, vector<1x1x256xi32>
    %42 = vector.shape_cast %41 : vector<1x1x256xi32> to vector<1x256xi32>
    %43 = vector.broadcast %42 : vector<1x256xi32> to vector<4x256xi32>
    %44 = arith.cmpi eq, %36, %43 : vector<4x256xi32>
    %45 = arith.extui %44 : vector<4x256xi1> to vector<4x256xi32>
    %46 = arith.sitofp %45 : vector<4x256xi32> to vector<4x256xf32>
    %cst_23 = arith.constant dense<0xFF800000> : vector<256xf32>
    %47 = vector.multi_reduction <maximumf>, %40, %cst_23 [0] : vector<4x256xf32> to vector<256xf32>
    %48 = vector.shape_cast %47 : vector<256xf32> to vector<1x256xf32>
    %49 = vector.broadcast %48 : vector<1x256xf32> to vector<4x256xf32>
    %50 = arith.subf %40, %49 : vector<4x256xf32>
    %51 = math.exp %50 : vector<4x256xf32>
    %cst_24 = arith.constant dense<0.000000e+00> : vector<256xf32>
    %52 = vector.multi_reduction <add>, %51, %cst_24 [0] : vector<4x256xf32> to vector<256xf32>
    %53 = vector.shape_cast %52 : vector<256xf32> to vector<1x256xf32>
    %54 = math.log %53 : vector<1x256xf32>
    %55 = arith.addf %54, %48 : vector<1x256xf32>
    %56 = vector.broadcast %35 : vector<4x1xf32> to vector<4x256xf32>
    %57 = arith.mulf %46, %56 : vector<4x256xf32>
    %cst_25 = arith.constant dense<0.000000e+00> : vector<256xf32>
    %58 = vector.multi_reduction <add>, %57, %cst_25 [0] : vector<4x256xf32> to vector<256xf32>
    %59 = vector.shape_cast %58 : vector<256xf32> to vector<1x256xf32>
    %60 = arith.mulf %57, %40 : vector<4x256xf32>
    %cst_26 = arith.constant dense<0.000000e+00> : vector<256xf32>
    %61 = vector.multi_reduction <add>, %60, %cst_26 [0] : vector<4x256xf32> to vector<256xf32>
    %62 = vector.shape_cast %61 : vector<256xf32> to vector<1x256xf32>
    %63 = arith.mulf %59, %55 : vector<1x256xf32>
    %64 = arith.subf %63, %62 : vector<1x256xf32>
    %65 = arith.addf %37, %64 : vector<1x256xf32>
    %66 = arith.addf %38, %59 : vector<1x256xf32>
    %67 = tpu.concatenate %33, %34, %65, %66 in 0 : vector<1x256xf32>, vector<1x256xf32>, vector<1x256xf32>, vector<1x256xf32> -> vector<4x256xf32>
    %c0_27 = arith.constant 0 : index
    %c0_28 = arith.constant 0 : index
    %68 = vector.load %arg9[%c0_27, %c0_28] : memref<4x256xf32, #tpu.memory_space<vmem>>, vector<4x256xf32>
    %69 = arith.addf %68, %67 : vector<4x256xf32>
    %c0_29 = arith.constant 0 : index
    %c0_30 = arith.constant 0 : index
    %70 = vector.load %arg9[%c0_29, %c0_30] : memref<4x256xf32, #tpu.memory_space<vmem>>, vector<4x256xf32>
    tpu.vector_store %arg9[%c0_29, %c0_30], %69 {strides = array<i32>} : memref<4x256xf32, #tpu.memory_space<vmem>>, vector<4x256xf32>,
    %c0_i32_31 = arith.constant 0 : i32
    %71 = arith.cmpi eq, %arg1, %c0_i32_31 : i32
    %72 = arith.extui %71 : i1 to i32
    %c0_i32_32 = arith.constant 0 : i32
    %73 = arith.cmpi ne, %72, %c0_i32_32 : i32
    scf.if %73 {
      %c0_33 = arith.constant 0 : index
      %c0_34 = arith.constant 0 : index
      %74 = vector.load %arg9[%c0_33, %c0_34] : memref<4x256xf32, #tpu.memory_space<vmem>>, vector<4x256xf32>
      %cst_35 = arith.constant dense<0.000000e+00> : vector<4xf32>
      %75 = vector.multi_reduction <add>, %74, %cst_35 [1] : vector<4x256xf32> to vector<4xf32>
      %76 = vector.shape_cast %75 : vector<4xf32> to vector<4x1xf32>
      %77 = vector.shape_cast %76 : vector<4x1xf32> to vector<4x1xf32>
      %78 = vector.broadcast %77 : vector<4x1xf32> to vector<4x128xf32>
      %c0_36 = arith.constant 0 : index
      %c0_37 = arith.constant 0 : index
      %c0_38 = arith.constant 0 : index
      %79 = vector.load %arg8[%c0_36, %c0_37, %c0_38] : memref<1x4x128xf32, #tpu.memory_space<vmem>>, vector<1x4x128xf32>
      %80 = vector.shape_cast %79 : vector<1x4x128xf32> to vector<4x128xf32>
      %81 = vector.shape_cast %78 : vector<4x128xf32> to vector<1x4x128xf32>
      tpu.vector_store %arg8[%c0_36, %c0_37, %c0_38], %81 {strides = array<i32>} : memref<1x4x128xf32, #tpu.memory_space<vmem>>, vector<1x4x128xf32>,
    } else {
    }
    return
  }
  func.func @transform_0(%arg0: i32, %arg1: i32) -> (i32, i32, i32) {
    %c0_i32 = arith.constant 0 : i32
    %c0_i32_0 = arith.constant 0 : i32
    return %arg0, %c0_i32, %arg1 : i32, i32, i32
  }
  func.func @transform_1(%arg0: i32, %arg1: i32) -> (i32, i32, i32) {
    %c0_i32 = arith.constant 0 : i32
    %c0_i32_0 = arith.constant 0 : i32
    return %arg0, %c0_i32, %arg1 : i32, i32, i32
  }
  func.func @transform_2(%arg0: i32, %arg1: i32) -> (i32, i32) {
    %c0_i32 = arith.constant 0 : i32
    %c0_i32_0 = arith.constant 0 : i32
    %c0_i32_1 = arith.constant 0 : i32
    return %c0_i32, %c0_i32_0 : i32, i32
  }
  func.func @transform_3(%arg0: i32, %arg1: i32) -> (i32, i32, i32) {
    %c0_i32 = arith.constant 0 : i32
    %c0_i32_0 = arith.constant 0 : i32
    return %arg0, %c0_i32, %arg1 : i32, i32, i32
  }
  func.func @transform_4(%arg0: i32, %arg1: i32) -> (i32, i32, i32) {
    %c0_i32 = arith.constant 0 : i32
    %c0_i32_0 = arith.constant 0 : i32
    return %arg0, %c0_i32, %arg1 : i32, i32, i32
  }
  func.func @transform_5(%arg0: i32, %arg1: i32) -> (i32, i32) {
    %c0_i32 = arith.constant 0 : i32
    %c0_i32_0 = arith.constant 0 : i32
    %c0_i32_1 = arith.constant 0 : i32
    return %c0_i32, %c0_i32_0 : i32, i32
  }
  func.func @transform_6(%arg0: i32, %arg1: i32) -> (i32, i32, i32) {
    %c0_i32 = arith.constant 0 : i32
    %c0_i32_0 = arith.constant 0 : i32
    %c0_i32_1 = arith.constant 0 : i32
    return %arg0, %c0_i32, %c0_i32_0 : i32, i32, i32
  }
}

module attributes {stable_mosaic.version = 11 : i64} {
  func.func @kernel(%arg0: i32, %arg1: i32, %arg2: memref<1x21x256xf32, #tpu.memory_space<vmem>>, %arg3: memref<1x1x256xi32, #tpu.memory_space<vmem>>, %arg4: memref<21x1xf32, #tpu.memory_space<vmem>>, %arg5: memref<1x2x128xf32, #tpu.memory_space<vmem>>, %arg6: memref<2x256xf32, #tpu.memory_space<vmem>>) attributes {dimension_semantics = [#tpu.dimension_semantics<parallel>, #tpu.dimension_semantics<arbitrary>], iteration_bounds = array<i64: 2, 1>, scalar_prefetch = 0 : i64, scratch_operands = 1 : i64, tpu.core_type = #tpu.core_type<tc>, window_params = [{transform_indices = @transform_0, window_bounds = array<i64: 1, 21, 256>}, {transform_indices = @transform_1, window_bounds = array<i64: 1, 1, 256>}, {pipeline_mode = #tpu.pipeline_mode<synchronous>, transform_indices = @transform_2, window_bounds = array<i64: 21, 1>}, {transform_indices = @transform_3, window_bounds = array<i64: 1, 2, 128>}]} {
    %c0_i32 = arith.constant 0 : i32
    %0 = arith.cmpi eq, %arg1, %c0_i32 : i32
    %1 = arith.extui %0 : i1 to i32
    %c0_i32_0 = arith.constant 0 : i32
    %2 = arith.cmpi ne, %1, %c0_i32_0 : i32
    scf.if %2 {
      %cst_19 = arith.constant 0.000000e+00 : f32
      %42 = vector.broadcast %cst_19 : f32 to vector<2x256xf32>
      %c0_20 = arith.constant 0 : index
      %c0_21 = arith.constant 0 : index
      %43 = vector.load %arg6[%c0_20, %c0_21] : memref<2x256xf32, #tpu.memory_space<vmem>>, vector<2x256xf32>
      tpu.vector_store %arg6[%c0_20, %c0_21], %42 {strides = array<i32>} : memref<2x256xf32, #tpu.memory_space<vmem>>, vector<2x256xf32>,
    } else {
    }
    %c0 = arith.constant 0 : index
    %c0_1 = arith.constant 0 : index
    %3 = vector.load %arg4[%c0, %c0_1] : memref<21x1xf32, #tpu.memory_space<vmem>>, vector<21x1xf32>
    %4 = tpu.iota {dimensions = array<i32: 0>} : vector<21x256xi32>
    %cst = arith.constant 0.000000e+00 : f32
    %5 = vector.broadcast %cst : f32 to vector<1x256xf32>
    %cst_2 = arith.constant 0.000000e+00 : f32
    %6 = vector.broadcast %cst_2 : f32 to vector<1x256xf32>
    %c0_3 = arith.constant 0 : index
    %c0_4 = arith.constant 0 : index
    %c0_5 = arith.constant 0 : index
    %7 = vector.load %arg2[%c0_3, %c0_4, %c0_5] : memref<1x21x256xf32, #tpu.memory_space<vmem>>, vector<1x21x256xf32>
    %8 = vector.shape_cast %7 : vector<1x21x256xf32> to vector<21x256xf32>
    %c0_6 = arith.constant 0 : index
    %c0_7 = arith.constant 0 : index
    %c0_8 = arith.constant 0 : index
    %9 = vector.load %arg3[%c0_6, %c0_7, %c0_8] : memref<1x1x256xi32, #tpu.memory_space<vmem>>, vector<1x1x256xi32>
    %10 = vector.shape_cast %9 : vector<1x1x256xi32> to vector<1x256xi32>
    %11 = vector.broadcast %10 : vector<1x256xi32> to vector<21x256xi32>
    %12 = arith.cmpi eq, %4, %11 : vector<21x256xi32>
    %13 = arith.extui %12 : vector<21x256xi1> to vector<21x256xi32>
    %14 = arith.sitofp %13 : vector<21x256xi32> to vector<21x256xf32>
    %cst_9 = arith.constant dense<0xFF800000> : vector<256xf32>
    %15 = vector.multi_reduction <maximumf>, %8, %cst_9 [0] : vector<21x256xf32> to vector<256xf32>
    %16 = vector.shape_cast %15 : vector<256xf32> to vector<1x256xf32>
    %17 = vector.broadcast %16 : vector<1x256xf32> to vector<21x256xf32>
    %18 = arith.subf %8, %17 : vector<21x256xf32>
    %19 = math.exp %18 : vector<21x256xf32>
    %cst_10 = arith.constant dense<0.000000e+00> : vector<256xf32>
    %20 = vector.multi_reduction <add>, %19, %cst_10 [0] : vector<21x256xf32> to vector<256xf32>
    %21 = vector.shape_cast %20 : vector<256xf32> to vector<1x256xf32>
    %22 = math.log %21 : vector<1x256xf32>
    %23 = arith.addf %22, %16 : vector<1x256xf32>
    %24 = vector.broadcast %3 : vector<21x1xf32> to vector<21x256xf32>
    %25 = arith.mulf %14, %24 : vector<21x256xf32>
    %cst_11 = arith.constant dense<0.000000e+00> : vector<256xf32>
    %26 = vector.multi_reduction <add>, %25, %cst_11 [0] : vector<21x256xf32> to vector<256xf32>
    %27 = vector.shape_cast %26 : vector<256xf32> to vector<1x256xf32>
    %28 = arith.mulf %25, %8 : vector<21x256xf32>
    %cst_12 = arith.constant dense<0.000000e+00> : vector<256xf32>
    %29 = vector.multi_reduction <add>, %28, %cst_12 [0] : vector<21x256xf32> to vector<256xf32>
    %30 = vector.shape_cast %29 : vector<256xf32> to vector<1x256xf32>
    %31 = arith.mulf %27, %23 : vector<1x256xf32>
    %32 = arith.subf %31, %30 : vector<1x256xf32>
    %33 = arith.addf %5, %32 : vector<1x256xf32>
    %34 = arith.addf %6, %27 : vector<1x256xf32>
    %35 = tpu.concatenate %33, %34 in 0 : vector<1x256xf32>, vector<1x256xf32> -> vector<2x256xf32>
    %c0_13 = arith.constant 0 : index
    %c0_14 = arith.constant 0 : index
    %36 = vector.load %arg6[%c0_13, %c0_14] : memref<2x256xf32, #tpu.memory_space<vmem>>, vector<2x256xf32>
    %37 = arith.addf %36, %35 : vector<2x256xf32>
    %c0_15 = arith.constant 0 : index
    %c0_16 = arith.constant 0 : index
    %38 = vector.load %arg6[%c0_15, %c0_16] : memref<2x256xf32, #tpu.memory_space<vmem>>, vector<2x256xf32>
    tpu.vector_store %arg6[%c0_15, %c0_16], %37 {strides = array<i32>} : memref<2x256xf32, #tpu.memory_space<vmem>>, vector<2x256xf32>,
    %c0_i32_17 = arith.constant 0 : i32
    %39 = arith.cmpi eq, %arg1, %c0_i32_17 : i32
    %40 = arith.extui %39 : i1 to i32
    %c0_i32_18 = arith.constant 0 : i32
    %41 = arith.cmpi ne, %40, %c0_i32_18 : i32
    scf.if %41 {
      %c0_19 = arith.constant 0 : index
      %c0_20 = arith.constant 0 : index
      %42 = vector.load %arg6[%c0_19, %c0_20] : memref<2x256xf32, #tpu.memory_space<vmem>>, vector<2x256xf32>
      %cst_21 = arith.constant dense<0.000000e+00> : vector<2xf32>
      %43 = vector.multi_reduction <add>, %42, %cst_21 [1] : vector<2x256xf32> to vector<2xf32>
      %44 = vector.shape_cast %43 : vector<2xf32> to vector<2x1xf32>
      %45 = vector.shape_cast %44 : vector<2x1xf32> to vector<2x1xf32>
      %46 = vector.broadcast %45 : vector<2x1xf32> to vector<2x128xf32>
      %c0_22 = arith.constant 0 : index
      %c0_23 = arith.constant 0 : index
      %c0_24 = arith.constant 0 : index
      %47 = vector.load %arg5[%c0_22, %c0_23, %c0_24] : memref<1x2x128xf32, #tpu.memory_space<vmem>>, vector<1x2x128xf32>
      %48 = vector.shape_cast %47 : vector<1x2x128xf32> to vector<2x128xf32>
      %49 = vector.shape_cast %46 : vector<2x128xf32> to vector<1x2x128xf32>
      tpu.vector_store %arg5[%c0_22, %c0_23, %c0_24], %49 {strides = array<i32>} : memref<1x2x128xf32, #tpu.memory_space<vmem>>, vector<1x2x128xf32>,
    } else {
    }
    return
  }
  func.func @transform_0(%arg0: i32, %arg1: i32) -> (i32, i32, i32) {
    %c0_i32 = arith.constant 0 : i32
    %c0_i32_0 = arith.constant 0 : i32
    return %arg0, %c0_i32, %arg1 : i32, i32, i32
  }
  func.func @transform_1(%arg0: i32, %arg1: i32) -> (i32, i32, i32) {
    %c0_i32 = arith.constant 0 : i32
    %c0_i32_0 = arith.constant 0 : i32
    return %arg0, %c0_i32, %arg1 : i32, i32, i32
  }
  func.func @transform_2(%arg0: i32, %arg1: i32) -> (i32, i32) {
    %c0_i32 = arith.constant 0 : i32
    %c0_i32_0 = arith.constant 0 : i32
    %c0_i32_1 = arith.constant 0 : i32
    return %c0_i32, %c0_i32_0 : i32, i32
  }
  func.func @transform_3(%arg0: i32, %arg1: i32) -> (i32, i32, i32) {
    %c0_i32 = arith.constant 0 : i32
    %c0_i32_0 = arith.constant 0 : i32
    %c0_i32_1 = arith.constant 0 : i32
    return %arg0, %c0_i32, %c0_i32_0 : i32, i32, i32
  }
}

</mosaic_0001>

<bundles_post_ra>
// kernel: _fused_forward.2
= control target key start
LH: loop header
LB: loop body
LE: loop exit
PB: predicated region body
PF: predicated region fallthrough
CT: control target
= control target key end

     0   :  { %s873_s21 = smov 0   ;;  %s875_s22 = smov 0   ;;  %s988_s0 = inlined_call_operand.vmem [shape: f32[2,4,256], index: 0, kind: input, shape index: {}]   ;;  %s989_s1 = inlined_call_operand.vmem [shape: s32[2,1,256], index: 1, kind: input, shape index: {}]   ;;  %s990_s2 = inlined_call_operand.vmem [shape: f32[4,1], index: 2, kind: input, shape index: {}]   ;;  %s991_s3 = inlined_call_operand.vmem [shape: f32[2,4,256], index: 3, kind: input, shape index: {}]   ;;  %s992_s4 = inlined_call_operand.vmem [shape: s32[2,1,256], index: 4, kind: input, shape index: {}]   ;;  %s993_s5 = inlined_call_operand.vmem [shape: f32[4,1], index: 5, kind: input, shape index: {}]   ;;  %s994_s6 = inlined_call_operand.vmem [shape: f32[2,4,128], index: 6, kind: output, shape index: {}]  }
   0x1   :  { %s877_s23 = smov 0  }
   0x2 LB: > { %s28_s24 = sadd.s32 1, %s830_s22  ;;  %p754_p0 = scmp.ge.s32.totalorder %s834_s23, 1  ;;  %s834_s23 = sphi %s877_s23, %s16_s23   ;;  %s830_s22 = sphi %s875_s22, %s996_s22   ;;  %s826_s21 = sphi %s873_s21, %s995_s21  }
   0x3   : > { %p30_p1 = scmp.ge.s32.totalorder %s28_s24, 2  ;;  %p280_p2 = scmp.lt.s32.totalorder %s834_s23, 3 }
   0x5   : > { %s998_s24 = smov (%p30_p1, %s28_s24), 0  ;;  %p281_p3 = pnand %p754_p0, %p280_p2 }
   0x6   : > { %v385_v0 = vld [vmem:[%s990_s2] sm:$0xf] (!%p281_p3)  ;;  %v836_v1 = vmov (!%p281_p3), 0   ;;  %p339_p4 = scmp.lt.s32.totalorder (!%p281_p3), %s826_s21, 1  ;;  %vm407_vm0 = vcmask (!%p281_p3), 1043456   ;;  %vm606_vm5 = vcmask (!%p281_p3), 1040384  }
   0x7   : > { %284 = sbr.rel (%p281_p3) target bundleno = 310 (0x136), region = 44  ;;  %797 = vset.pattern.permute.xlu0 (!%p281_p3), %v836_v1  ;;  %v497_v2 = vld [vmem:[%s993_s5] sm:$0xf] (!%p281_p3)  ;;  %vm609_vm6 = vcmask (!%p281_p3), 1041408   ;;  %vm612_vm7 = vcmask (!%p281_p3), 1042432  }
   0x8   : > { %454 = vperm.xlu0 (!%p281_p3), %797, %v385_v0  }
   0xc   : > { %563 = vperm.xlu0 (!%p281_p3), %797, %v497_v2  }
   0xe   : > { %s1000_s21 = smov (!%p339_p4, %s826_s21), 1 }
   0xf   : > { %s768_s29 = sshll.u32 %s1000_s21, 3  ;;  %s757_s12 = sshll.u32 %s1000_s21, 1 }
  0x10   : > { %s346_s8 = scalar_lea.vmem %s988_s0, %s768_s29  ;;  %s365_s11 = scalar_lea.vmem %s991_s3, %s768_s29 }
  0x11   : > { %v906_v3 = vld [vmem:[%s346_s8] sm:$0xff]  ;;  %s355_s15 = scalar_lea.vmem %s989_s1, %s757_s12  ;;  %s374_s18 = scalar_lea.vmem %s992_s4, %s757_s12 }
  0x12   : > { %v908_v4 = vld [vmem:[%s365_s11] sm:$0xff]  ;;  %v912_v5 = vcombine.high %v906_v3, %v906_v3  ;;  %v408_v7 = vsel %vm407_vm0, %v906_v3, -inf  ;;  %s761_s19 = sshll.u32 %s1000_s21, 2 }
  0x13   : > { %v916_v6 = vcombine.high %v908_v4, %v908_v4  ;;  %v517_v9 = vsel %vm407_vm0, %v908_v4, -inf  ;;  %v409_v11 = vrot.slane %v408_v7, 4  ;;  %s379_s26 = scalar_lea.vmem %s994_s6, %s761_s19 }
  0x14   : > { %v415_v8 = vsel %vm407_vm0, %v912_v5, -inf  ;;  %v518_v13 = vrot.slane %v517_v9, 4 }
  0x15   : > { %v524_v10 = vsel %vm407_vm0, %v916_v6, -inf  ;;  %v416_v12 = vrot.slane %v415_v8, 4  ;;  %v410_v15 = vmax.f32 %v408_v7, %v409_v11 }
  0x16   : > { %v525_v14 = vrot.slane %v524_v10, 4  ;;  %v519_v17 = vmax.f32 %v517_v9, %v518_v13 }
  0x17   : > { %v417_v16 = vmax.f32 %v415_v8, %v416_v12  ;;  %v411_v19 = vrot.slane %v410_v15, 2  ;;  %v386_v8 = vlaneseq }
  0x18   : > { %v526_v18 = vmax.f32 %v524_v10, %v525_v14  ;;  %v520_v21 = vrot.slane %v519_v17, 2 }
  0x19   : > { %v418_v20 = vrot.slane %v417_v16, 2  ;;  %v412_v23 = vmax.f32 %v410_v15, %v411_v19  ;;  %v387_v13 = vshrl.u32 %v386_v8, 7 }
  0x1a   : > { %v527_v22 = vrot.slane %v526_v18, 2  ;;  %v521_v25 = vmax.f32 %v519_v17, %v520_v21  ;;  %v389_v17 = vld [vmem:[%s355_s15] sm:$0x3] }
  0x1b   : > { %v419_v24 = vmax.f32 %v417_v16, %v418_v20  ;;  %v413_v27 = vrot.slane %v412_v23, 1  ;;  %v392_v15 = vsub.s32 0, %v387_v13  ;;  %v396_v16 = vsub.s32 1, %v387_v13  ;;  %v499_v20 = vld [vmem:[%s374_s18] sm:$0x3] }
  0x1c   : > { %v528_v26 = vmax.f32 %v526_v18, %v527_v22  ;;  %v522_v29 = vrot.slane %v521_v25, 1 }
  0x1d   : > { %v420_v28 = vrot.slane %v419_v24, 1  ;;  %v926_v31 = vmax.f32 %v412_v23, %v413_v27  ;;  %v393_v18 = vrot.slane %v389_v17, %v392_v15  ;;  %v397_v19 = vrot.slane %v389_v17, %v396_v16 }
  0x1e   : > { %v529_v30 = vrot.slane %v528_v26, 1  ;;  %v930_v33 = vmax.f32 %v521_v25, %v522_v29  ;;  %v503_v23 = vrot.slane %v499_v20, %v392_v15  ;;  %v837_v27 = vmov 0.0  }
  0x1f   : > { %v928_v32 = vmax.f32 %v419_v24, %v420_v28  ;;  %vm398_vm1 = vcmp.eq.s32.totalorder %v387_v13, %v393_v18  ;;  %vm399_vm2 = vcmp.eq.s32.totalorder %v387_v13, %v397_v19  ;;  %v507_v24 = vrot.slane %v499_v20, %v396_v16 }
  0x20   : > { %v932_v34 = vmax.f32 %v528_v26, %v529_v30  ;;  %v762_v28 = vsel %vm398_vm1, 1.0, %v837_v27  ;;  %v763_v29 = vsel %vm399_vm2, 1.0, %v837_v27  ;;  %vm508_vm3 = vcmp.eq.s32.totalorder %v387_v13, %v503_v23 }
  0x21   : > { %v424_v35 = vcombine.low %v926_v31, %v928_v32  ;;  %vm509_vm4 = vcmp.eq.s32.totalorder %v387_v13, %v507_v24 }
  0x22   : > { %v533_v36 = vcombine.low %v930_v33, %v932_v34 }
  0x23   : > { %v426_v37 = vsub.f32 %v906_v3, %v424_v35 }
  0x24   : > { %v535_v38 = vsub.f32 %v908_v4, %v533_v36 }
  0x25   : > { %v427_v39 = vmul.f32 1.442695, %v426_v37 }
  0x26   : > { %v536_v40 = vmul.f32 1.442695, %v535_v38 }
  0x27   : > { %800 = vpow2.f32 %v427_v39 }
  0x28   : > { %802 = vpow2.f32 %v536_v40 }
  0x31   : > { %v801_v41 = vpop.eup %800 }
  0x32   : > { %v803_v42 = vpop.eup %802  ;;  %v430_v43 = vcombine.high %v801_v41, %v801_v41  ;;  %v432_v45 = vsel %vm407_vm0, %v801_v41, 0.0 }
  0x33   : > { %v539_v44 = vcombine.high %v803_v42, %v803_v42  ;;  %v541_v47 = vsel %vm407_vm0, %v803_v42, 0.0  ;;  %v433_v48 = vrot.slane %v432_v45, 4 }
  0x34   : > { %v439_v46 = vsel %vm407_vm0, %v430_v43, 0.0  ;;  %v542_v51 = vrot.slane %v541_v47, 4  ;;  %v764_v43 = vsel %vm508_vm3, 1.0, %v837_v27 }
  0x35   : > { %v548_v49 = vsel %vm407_vm0, %v539_v44, 0.0  ;;  %v440_v50 = vrot.slane %v439_v46, 4  ;;  %v434_v53 = vadd.f32 %v433_v48, %v432_v45  ;;  %v765_v44 = vsel %vm509_vm4, 1.0, %v837_v27 }
  0x36   : > { %v549_v52 = vrot.slane %v548_v49, 4  ;;  %v543_v55 = vadd.f32 %v542_v51, %v541_v47 }
  0x37   : > { %v441_v54 = vadd.f32 %v440_v50, %v439_v46  ;;  %v435_v57 = vrot.slane %v434_v53, 2 }
  0x38   : > { %v550_v56 = vadd.f32 %v549_v52, %v548_v49  ;;  %v544_v59 = vrot.slane %v543_v55, 2 }
  0x39   : > { %v442_v58 = vrot.slane %v441_v54, 2  ;;  %v436_v61 = vadd.f32 %v435_v57, %v434_v53 }
  0x3a   : > { %v551_v60 = vrot.slane %v550_v56, 2  ;;  %v545_v63 = vadd.f32 %v544_v59, %v543_v55 }
  0x3b   : > { %v443_v62 = vadd.f32 %v442_v58, %v441_v54  ;;  %v437_v1 = vrot.slane %v436_v61, 1 }
  0x3c   : > { %v552_v0 = vadd.f32 %v551_v60, %v550_v56  ;;  %v546_v7 = vrot.slane %v545_v63, 1 }
  0x3d   : > { %v444_v2 = vrot.slane %v443_v62, 1  ;;  %v438_v10 = vadd.f32 %v437_v1, %v436_v61 }
  0x3e   : > { %v553_v9 = vrot.slane %v552_v0, 1  ;;  %v547_v12 = vadd.f32 %v546_v7, %v545_v63 }
  0x3f   : > { %v445_v11 = vadd.f32 %v444_v2, %v443_v62  ;;  %804 = vlog2.f32 %v438_v10 }
  0x40   : > { %v554_v14 = vadd.f32 %v553_v9, %v552_v0 }
  0x41   : > { %806 = vlog2.f32 %v445_v11 }
  0x42   : > { %808 = vlog2.f32 %v547_v12 }
  0x43   : > { %810 = vlog2.f32 %v554_v14 }
  0x49   : > { %v805_v21 = vpop.eup %804 }
  0x4a   : > { %v447_v30 = vmul.f32 0.6931472, %v805_v21 }
  0x4b   : > { %v807_v22 = vpop.eup %806 }
  0x4c   : > { %v809_v25 = vpop.eup %808  ;;  %v449_v35 = vmul.f32 0.6931472, %v807_v22  ;;  %v450_v41 = vadd.f32 %v447_v30, %v926_v31 }
  0x4d   : > { %v811_v26 = vpop.eup %810  ;;  %v556_v37 = vmul.f32 0.6931472, %v809_v25 }
  0x4e   : > { %v558_v38 = vmul.f32 0.6931472, %v811_v26  ;;  %v451_v42 = vadd.f32 %v449_v35, %v928_v32 }
  0x4f   : > { %v958_v52 = vadd.f32 %v556_v37, %v930_v33 }
  0x50   : > { %v961_v31 = vadd.f32 %v558_v38, %v932_v34 }
  0x87   : > { %v455_v36 = vpop.permute.xlu0 %454 }
  0x88   : > { %v457_v39 = vmul.f32 %v762_v28, %v455_v36  ;;  %v458_v40 = vmul.f32 %v763_v29, %v455_v36 }
  0x8a   : > { %v459_v45 = vsel %vm407_vm0, %v457_v39, 0.0  ;;  %v466_v46 = vsel %vm407_vm0, %v458_v40, 0.0  ;;  %v473_v47 = vmul.f32 %v457_v39, %v906_v3  ;;  %v474_v48 = vmul.f32 %v458_v40, %v912_v5 }
  0x8b   : > { %v460_v49 = vrot.slane %v459_v45, 4  ;;  %v467_v50 = vrot.slane %v466_v46, 4  ;;  %v564_v51 = vpop.permute.xlu0 %563 }
  0x8c   : > { %v475_v32 = vsel %vm407_vm0, %v473_v47, 0.0  ;;  %v482_v53 = vsel %vm407_vm0, %v474_v48, 0.0  ;;  %v566_v54 = vmul.f32 %v764_v43, %v564_v51  ;;  %v567_v55 = vmul.f32 %v765_v44, %v564_v51 }
  0x8d   : > { %v461_v56 = vadd.f32 %v460_v49, %v459_v45  ;;  %v468_v57 = vadd.f32 %v467_v50, %v466_v46  ;;  %v476_v3 = vrot.slane %v475_v32, 4  ;;  %v483_v58 = vrot.slane %v482_v53, 4 }
  0x8e   : > { %v568_v5 = vsel %vm407_vm0, %v566_v54, 0.0  ;;  %v575_v59 = vsel %vm407_vm0, %v567_v55, 0.0  ;;  %v582_v33 = vmul.f32 %v566_v54, %v908_v4  ;;  %v583_v60 = vmul.f32 %v567_v55, %v916_v6 }
  0x8f   : > { %v462_v34 = vrot.slane %v461_v56, 2  ;;  %v469_v61 = vrot.slane %v468_v57, 2  ;;  %v477_v62 = vadd.f32 %v476_v3, %v475_v32  ;;  %v484_v63 = vadd.f32 %v483_v58, %v482_v53 }
  0x90   : > { %v569_v0 = vrot.slane %v568_v5, 4  ;;  %v576_v1 = vrot.slane %v575_v59, 4  ;;  %v584_v2 = vsel %vm407_vm0, %v582_v33, 0.0  ;;  %v591_v7 = vsel %vm407_vm0, %v583_v60, 0.0 }
  0x91   : > { %v463_v8 = vadd.f32 %v462_v34, %v461_v56  ;;  %v470_v9 = vadd.f32 %v469_v61, %v468_v57  ;;  %v478_v10 = vrot.slane %v477_v62, 2  ;;  %v485_v11 = vrot.slane %v484_v63, 2 }
  0x92   : > { %v570_v12 = vadd.f32 %v569_v0, %v568_v5  ;;  %v577_v13 = vadd.f32 %v576_v1, %v575_v59  ;;  %v585_v14 = vrot.slane %v584_v2, 4  ;;  %v592_v4 = vrot.slane %v591_v7, 4 }
  0x93   : > { %v464_v15 = vrot.slane %v463_v8, 1  ;;  %v471_v6 = vrot.slane %v470_v9, 1  ;;  %v479_v16 = vadd.f32 %v478_v10, %v477_v62  ;;  %v486_v17 = vadd.f32 %v485_v11, %v484_v63 }
  0x94   : > { %v571_v18 = vrot.slane %v570_v12, 2  ;;  %v578_v19 = vrot.slane %v577_v13, 2  ;;  %v586_v20 = vadd.f32 %v585_v14, %v584_v2  ;;  %v593_v21 = vadd.f32 %v592_v4, %v591_v7 }
  0x95   : > { %v465_v22 = vadd.f32 %v464_v15, %v463_v8  ;;  %v472_v23 = vadd.f32 %v471_v6, %v470_v9  ;;  %v480_v24 = vrot.slane %v479_v16, 1  ;;  %v487_v25 = vrot.slane %v486_v17, 1 }
  0x96   : > { %v572_v26 = vadd.f32 %v571_v18, %v570_v12  ;;  %v579_v27 = vadd.f32 %v578_v19, %v577_v13  ;;  %v587_v28 = vrot.slane %v586_v20, 2  ;;  %v594_v29 = vrot.slane %v593_v21, 2 }
  0x97   : > { %v481_v30 = vadd.f32 %v480_v24, %v479_v16  ;;  %v488_v35 = vadd.f32 %v487_v25, %v486_v17  ;;  %v489_v36 = vmul.f32 %v465_v22, %v450_v41  ;;  %v490_v37 = vmul.f32 %v472_v23, %v451_v42 }
  0x98   : > { %v573_v38 = vrot.slane %v572_v26, 1  ;;  %v580_v39 = vrot.slane %v579_v27, 1  ;;  %v588_v40 = vadd.f32 %v587_v28, %v586_v20  ;;  %v595_v43 = vadd.f32 %v594_v29, %v593_v21 }
  0x99   : > { %v491_v48 = vsub.f32 %v489_v36, %v481_v30  ;;  %v492_v49 = vsub.f32 %v490_v37, %v488_v35 }
  0x9a   : > { %v574_v44 = vadd.f32 %v573_v38, %v572_v26  ;;  %v581_v45 = vadd.f32 %v580_v39, %v579_v27  ;;  %v589_v46 = vrot.slane %v588_v40, 1  ;;  %v596_v47 = vrot.slane %v595_v43, 1 }
  0x9b   : > { %v607_v54 = vsel %vm606_vm5, %v491_v48, %v465_v22  ;;  %v608_v55 = vsel %vm606_vm5, %v492_v49, %v472_v23 }
  0x9c   : > { %v590_v50 = vadd.f32 %v589_v46, %v588_v40  ;;  %v597_v51 = vadd.f32 %v596_v47, %v595_v43  ;;  %v598_v32 = vmul.f32 %v574_v44, %v958_v52  ;;  %v599_v53 = vmul.f32 %v581_v45, %v961_v31 }
  0x9e   : > { %v600_v41 = vsub.f32 %v598_v32, %v590_v50  ;;  %v601_v42 = vsub.f32 %v599_v53, %v597_v51 }
  0xa0   : > { %v610_v56 = vsel %vm609_vm6, %v607_v54, %v600_v41  ;;  %v611_v57 = vsel %vm609_vm6, %v608_v55, %v601_v42 }
  0xa1   : > { %v613_v3 = vsel %vm612_vm7, %v610_v56, %v574_v44  ;;  %v614_v58 = vsel %vm612_vm7, %v611_v57, %v581_v45 }
  0xa2   : > { %v618_v5 = vcombine.low %v613_v3, %v614_v58  ;;  %v770_v59 = vcombine.low %v614_v58, %v614_v58 }
  0xa4   : > { %v629_v33 = vsel %vm407_vm0, %v618_v5, 0.0  ;;  %v630_v60 = vsel %vm407_vm0, %v770_v59, 0.0 }
  0xa5   : > { %v631_v52 = vadd.f32 %v630_v60, %v629_v33 }
  0xa7   : > { %632 = vadd.xlane.f32.xlu1 %v631_v52 }
 0x134   : > { %v633_v31 = vpop.xlane.xlu1 %632 }
 0x135   : > { %634 = vst [vmem:[%s379_s26] sm:$0xf] %v633_v31 }
 0x136 PF: > { %s16_s23 = sadd.s32 1, %s834_s23   ;;  %s995_s21 = smov %s830_s22 }
 0x137   : > { %p13_p5 = scmp.ge.s32.totalorder %s16_s23, 4   ;;  %s996_s22 = smov %s998_s24 }
 0x139   :  { %15 = sbr.rel (!%p13_p5) target bundleno = 2 (0x2), region = 91 }

// kernel: _fused_forward.3
= control target key start
LH: loop header
LB: loop body
LE: loop exit
PB: predicated region body
PF: predicated region fallthrough
CT: control target
= control target key end

     0   :  { %s638_s12 = smov 0   ;;  %s640_s13 = smov 0   ;;  %s757_s0 = inlined_call_operand.vmem [shape: f32[2,21,256], index: 0, kind: input, shape index: {}]   ;;  %s758_s1 = inlined_call_operand.vmem [shape: s32[2,1,256], index: 1, kind: input, shape index: {}]   ;;  %s759_s2 = inlined_call_operand.vmem [shape: f32[21,1], index: 2, kind: input, shape index: {}]   ;;  %s760_s3 = inlined_call_operand.vmem [shape: f32[2,2,128], index: 3, kind: output, shape index: {}]  }
   0x1   :  { %s642_s14 = smov 0  }
   0x2 LB: > { %s25_s15 = sadd.s32 1, %s609_s13  ;;  %p532_p0 = scmp.ge.s32.totalorder %s613_s14, 1  ;;  %s613_s14 = sphi %s642_s14, %s13_s14   ;;  %s609_s13 = sphi %s640_s13, %s762_s13   ;;  %s605_s12 = sphi %s638_s12, %s761_s12  }
   0x3   : > { %p27_p1 = scmp.ge.s32.totalorder %s25_s15, 2  ;;  %p172_p2 = scmp.lt.s32.totalorder %s613_s14, 3 }
   0x5   : > { %s764_s15 = smov (%p27_p1, %s25_s15), 0  ;;  %p173_p3 = pnand %p532_p0, %p172_p2 }
   0x6   : > { %v235_v0 = vld [vmem:[%s759_s2] sm:$0xff] (!%p173_p3)  ;;  %v237_v1 = vld [vmem:[%s759_s2 + $0x10] sm:$0x1f] (!%p173_p3)  ;;  %v615_v2 = vmov (!%p173_p3), 0   ;;  %v616_v3 = vmov (!%p173_p3), 0.0   ;;  %v236_v4 = vld [vmem:[%s759_s2 + $0x8] sm:$0xff] (!%p173_p3)  ;;  %v238_v55 = vlaneseq (!%p173_p3) }
   0x7   : > { %176 = sbr.rel (%p173_p3) target bundleno = 325 (0x145), region = 32  ;;  %573 = vset.pattern.permute.xlu0 (!%p173_p3), %v615_v2  ;;  %574 = vset.pattern.permute.xlu1 (!%p173_p3), %v615_v2  ;;  %234 = vst [vmem:[#allocation2] sm:$0xf] (!%p173_p3), %v616_v3  ;;  %p208_p4 = scmp.lt.s32.totalorder (!%p173_p3), %s605_s12, 1  ;;  %vm275_vm0 = vcmask (!%p173_p3), 1044480   ;;  %vm407_vm7 = vcmask (!%p173_p3), 1040384  }
   0x8   : > { %338 = vperm.xlu0 (!%p173_p3), %573, %v235_v0   ;;  %348 = vperm.xlu1 (!%p173_p3), %574, %v237_v1   ;;  %v711_v58 = vshrl.u32 (!%p173_p3), %v238_v55, 7  ;;  %vm439_vm8 = vcmask (!%p173_p3), 1041408  }
   0xa   : > { %v251_v61 = vsub.s32 (!%p173_p3), 0, %v711_v58  ;;  %v255_v62 = vsub.s32 (!%p173_p3), 1, %v711_v58  ;;  %v241_v2 = vadd.s32 (!%p173_p3), 16, %v711_v58 }
   0xc   : > { %343 = vperm.xlu0 (!%p173_p3), %573, %v236_v4  }
   0xe   : > { %s766_s12 = smov (!%p208_p4, %s605_s12), 1 }
   0xf   : > { %s545_s22 = smul.u32 48, %s766_s12  ;;  %s534_s26 = sshll.u32 %s766_s12, 1 }
  0x10   : > { %s224_s29 = scalar_lea.vmem %s758_s1, %s534_s26  ;;  %s229_s5 = scalar_lea.vmem %s760_s3, %s534_s26 }
  0x11   : > { %s215_s25 = scalar_lea.vmem %s757_s0, %s545_s22  ;;  %v248_v0 = vld [vmem:[%s224_s29] sm:$0x3] }
  0x12   : > { %v672_v5 = vld [vmem:[%s215_s25 + $0x20] sm:$0x1f]  ;;  %v674_v6 = vld [vmem:[%s215_s25 + $0x28] sm:$0x1f]  ;;  %v685_v12 = vld [vmem:[%s215_s25 + $0x10] sm:$0xff]  ;;  %v252_v4 = vrot.slane %v248_v0, %v251_v61 }
  0x13   : > { %v676_v7 = vld [vmem:[%s215_s25] sm:$0xff]  ;;  %v276_v8 = vsel %vm275_vm0, %v672_v5, -inf  ;;  %v680_v9 = vld [vmem:[%s215_s25 + $0x8] sm:$0xff]  ;;  %v285_v10 = vsel %vm275_vm0, %v674_v6, -inf  ;;  %v688_v14 = vld [vmem:[%s215_s25 + $0x18] sm:$0xff] }
  0x14   : > { %v277_v11 = vmax.f32 %v676_v7, %v276_v8  ;;  %v286_v13 = vmax.f32 %v680_v9, %v285_v10  ;;  %v256_v8 = vrot.slane %v248_v0, %v255_v62  ;;  %vm261_vm1 = vcmp.eq.s32.totalorder %v241_v2, %v252_v4 }
  0x15   : > { %vm257_vm3 = vcmp.eq.s32.totalorder %v711_v58, %v252_v4  ;;  %v617_v0 = vmov 1983009808  }
  0x16   : > { %v278_v15 = vmax.f32 %v277_v11, %v685_v12  ;;  %v287_v16 = vmax.f32 %v286_v13, %v688_v14  ;;  %v240_v13 = vadd.s32 8, %v711_v58  ;;  %vm262_vm2 = vcmp.eq.s32.totalorder %v241_v2, %v256_v8 }
  0x17   : > { %vm258_vm4 = vcmp.eq.s32.totalorder %v711_v58, %v256_v8 }
  0x18   : > { %v279_v17 = vrot.slane %v278_v15, 4  ;;  %v288_v18 = vrot.slane %v287_v16, 4  ;;  %vm259_vm5 = vcmp.eq.s32.totalorder %v240_v13, %v252_v4  ;;  %vm260_vm6 = vcmp.eq.s32.totalorder %v240_v13, %v256_v8 }
  0x1a   : > { %v280_v19 = vmax.f32 %v278_v15, %v279_v17  ;;  %v289_v20 = vmax.f32 %v287_v16, %v288_v18  ;;  %v540_v17 = vsel %vm261_vm1, 1.0, %v616_v3  ;;  %v541_v18 = vsel %vm262_vm2, 1.0, %v616_v3 }
  0x1c   : > { %v281_v21 = vrot.slane %v280_v19, 2  ;;  %v290_v22 = vrot.slane %v289_v20, 2 }
  0x1e   : > { %v282_v23 = vmax.f32 %v280_v19, %v281_v21  ;;  %v291_v24 = vmax.f32 %v289_v20, %v290_v22  ;;  %v536_v19 = vsel %vm257_vm3, 1.0, %v616_v3  ;;  %v537_v20 = vsel %vm258_vm4, 1.0, %v616_v3 }
  0x20   : > { %v283_v25 = vrot.slane %v282_v23, 1  ;;  %v292_v26 = vrot.slane %v291_v24, 1 }
  0x22   : > { %v692_v27 = vmax.f32 %v282_v23, %v283_v25  ;;  %v694_v28 = vmax.f32 %v291_v24, %v292_v26 }
  0x24   : > { %v294_v29 = vsub.f32 %v676_v7, %v692_v27  ;;  %v295_v30 = vsub.f32 %v680_v9, %v694_v28  ;;  %v296_v31 = vsub.f32 %v685_v12, %v692_v27  ;;  %v297_v32 = vsub.f32 %v688_v14, %v694_v28 }
  0x25   : > { %v298_v33 = vsub.f32 %v672_v5, %v692_v27  ;;  %v299_v35 = vsub.f32 %v674_v6, %v694_v28 }
  0x26   : > { %v300_v34 = vmul.f32 1.442695, %v294_v29  ;;  %v302_v36 = vmul.f32 1.442695, %v295_v30  ;;  %v304_v37 = vmul.f32 1.442695, %v296_v31 }
  0x27   : > { %v306_v38 = vmul.f32 1.442695, %v297_v32  ;;  %v308_v39 = vmul.f32 1.442695, %v298_v33  ;;  %v310_v40 = vmul.f32 1.442695, %v299_v35 }
  0x28   : > { %575 = vpow2.f32 %v300_v34  ;;  %v538_v29 = vsel %vm259_vm5, 1.0, %v616_v3  ;;  %v539_v30 = vsel %vm260_vm6, 1.0, %v616_v3 }
  0x29   : > { %577 = vpow2.f32 %v302_v36 }
  0x2a   : > { %579 = vpow2.f32 %v304_v37 }
  0x2b   : > { %581 = vpow2.f32 %v306_v38 }
  0x2c   : > { %583 = vpow2.f32 %v308_v39 }
  0x2d   : > { %585 = vpow2.f32 %v310_v40 }
  0x32   : > { %v576_v41 = vpop.eup %575 }
  0x33   : > { %v578_v42 = vpop.eup %577 }
  0x34   : > { %v580_v43 = vpop.eup %579 }
  0x35   : > { %v582_v44 = vpop.eup %581  ;;  %v312_v47 = vadd.f32 %v580_v43, %v576_v41 }
  0x36   : > { %v584_v45 = vpop.eup %583  ;;  %v321_v49 = vadd.f32 %v582_v44, %v578_v42 }
  0x37   : > { %v586_v46 = vpop.eup %585  ;;  %v313_v48 = vsel %vm275_vm0, %v584_v45, 0.0 }
  0x38   : > { %v322_v50 = vsel %vm275_vm0, %v586_v46, 0.0  ;;  %v314_v51 = vadd.f32 %v313_v48, %v312_v47 }
  0x39   : > { %v323_v52 = vadd.f32 %v322_v50, %v321_v49 }
  0x3a   : > { %v315_v53 = vrot.slane %v314_v51, 4 }
  0x3b   : > { %v324_v54 = vrot.slane %v323_v52, 4 }
  0x3c   : > { %v316_v56 = vadd.f32 %v315_v53, %v314_v51 }
  0x3d   : > { %v325_v57 = vadd.f32 %v324_v54, %v323_v52 }
  0x3e   : > { %v317_v59 = vrot.slane %v316_v56, 2 }
  0x3f   : > { %v326_v60 = vrot.slane %v325_v57, 2 }
  0x40   : > { %v318_v63 = vadd.f32 %v317_v59, %v316_v56 }
  0x41   : > { %v327_v1 = vadd.f32 %v326_v60, %v325_v57 }
  0x42   : > { %v319_v10 = vrot.slane %v318_v63, 1 }
  0x43   : > { %v328_v11 = vrot.slane %v327_v1, 1 }
  0x44   : > { %v320_v15 = vadd.f32 %v319_v10, %v318_v63 }
  0x45   : > { %v329_v16 = vadd.f32 %v328_v11, %v327_v1  ;;  %v415_v1 = vunpack.c.l.s4 %v617_v0 }
  0x46   : > { %587 = vlog2.f32 %v320_v15 }
  0x47   : > { %589 = vlog2.f32 %v329_v16 }
  0x50   : > { %v588_v46 = vpop.eup %587 }
  0x51   : > { %v331_v54 = vmul.f32 0.6931472, %v588_v46 }
  0x53   : > { %v334_v2 = vadd.f32 %v331_v54, %v692_v27 }
  0x87   : > { %v339_v21 = vpop.permute.xlu0 %338  ;;  %v349_v22 = vpop.permute.xlu1 %348 }
  0x88   : > { %v355_v23 = vmul.f32 %v540_v17, %v349_v22  ;;  %v356_v24 = vmul.f32 %v541_v18, %v349_v22  ;;  %v351_v25 = vmul.f32 %v536_v19, %v339_v21  ;;  %v352_v26 = vmul.f32 %v537_v20, %v339_v21 }
  0x89   : > { %v416_v19 = vunpack.c.0.s8 %v415_v1 }
  0x8a   : > { %v379_v32 = vmul.f32 %v355_v23, %v672_v5  ;;  %v380_v33 = vmul.f32 %v356_v24, %v674_v6  ;;  %v375_v36 = vmul.f32 %v351_v25, %v676_v7  ;;  %v376_v37 = vmul.f32 %v352_v26, %v680_v9  ;;  %v590_v9 = vpop.eup %589 }
  0x8b   : > { %v344_v31 = vpop.permute.xlu0 %343  ;;  %v358_v38 = vsel %vm275_vm0, %v355_v23, 0.0  ;;  %v367_v39 = vsel %vm275_vm0, %v356_v24, 0.0  ;;  %v419_v27 = vsub.s32 %v416_v19, %v711_v58 }
  0x8c   : > { %v353_v34 = vmul.f32 %v538_v29, %v344_v31  ;;  %v354_v35 = vmul.f32 %v539_v30, %v344_v31  ;;  %v382_v5 = vsel %vm275_vm0, %v379_v32, 0.0  ;;  %v391_v6 = vsel %vm275_vm0, %v380_v33, 0.0  ;;  %v410_v30 = vld [vmem:[#allocation2] sm:$0xf] }
  0x8e   : > { %v357_v40 = vadd.f32 %v353_v34, %v351_v25  ;;  %v366_v41 = vadd.f32 %v354_v35, %v352_v26  ;;  %v377_v42 = vmul.f32 %v353_v34, %v685_v12  ;;  %v378_v3 = vmul.f32 %v354_v35, %v688_v14 }
  0x8f   : > { %v333_v14 = vmul.f32 0.6931472, %v590_v9 }
  0x90   : > { %v381_v43 = vadd.f32 %v377_v42, %v375_v36  ;;  %v390_v44 = vadd.f32 %v378_v3, %v376_v37  ;;  %v359_v45 = vadd.f32 %v358_v38, %v357_v40  ;;  %v368_v7 = vadd.f32 %v367_v39, %v366_v41 }
  0x91   : > { %v335_v4 = vadd.f32 %v333_v14, %v694_v28 }
  0x92   : > { %v360_v47 = vrot.slane %v359_v45, 4  ;;  %v369_v48 = vrot.slane %v368_v7, 4  ;;  %v383_v49 = vadd.f32 %v382_v5, %v381_v43  ;;  %v392_v50 = vadd.f32 %v391_v6, %v390_v44 }
  0x94   : > { %v361_v51 = vadd.f32 %v360_v47, %v359_v45  ;;  %v370_v52 = vadd.f32 %v369_v48, %v368_v7  ;;  %v384_v53 = vrot.slane %v383_v49, 4  ;;  %v393_v12 = vrot.slane %v392_v50, 4 }
  0x96   : > { %v362_v55 = vrot.slane %v361_v51, 2  ;;  %v371_v56 = vrot.slane %v370_v52, 2  ;;  %v385_v57 = vadd.f32 %v384_v53, %v383_v49  ;;  %v394_v59 = vadd.f32 %v393_v12, %v392_v50 }
  0x98   : > { %v363_v60 = vadd.f32 %v362_v55, %v361_v51  ;;  %v372_v61 = vadd.f32 %v371_v56, %v370_v52  ;;  %v386_v62 = vrot.slane %v385_v57, 2  ;;  %v395_v63 = vrot.slane %v394_v59, 2 }
  0x9a   : > { %v364_v8 = vrot.slane %v363_v60, 1  ;;  %v373_v10 = vrot.slane %v372_v61, 1  ;;  %v387_v11 = vadd.f32 %v386_v62, %v385_v57  ;;  %v396_v13 = vadd.f32 %v395_v63, %v394_v59 }
  0x9c   : > { %v365_v15 = vadd.f32 %v364_v8, %v363_v60  ;;  %v374_v16 = vadd.f32 %v373_v10, %v372_v61  ;;  %v388_v17 = vrot.slane %v387_v11, 1  ;;  %v397_v18 = vrot.slane %v396_v13, 1 }
  0x9e   : > { %v389_v20 = vadd.f32 %v388_v17, %v387_v11  ;;  %v398_v21 = vadd.f32 %v397_v18, %v396_v13  ;;  %v399_v22 = vmul.f32 %v365_v15, %v334_v2  ;;  %v400_v23 = vmul.f32 %v374_v16, %v335_v4 }
  0xa0   : > { %v401_v24 = vsub.f32 %v399_v22, %v389_v20  ;;  %v402_v25 = vsub.f32 %v400_v23, %v398_v21 }
  0xa2   : > { %v408_v28 = vsel %vm407_vm7, %v401_v24, %v365_v15  ;;  %v409_v26 = vsel %vm407_vm7, %v402_v25, %v374_v16 }
  0xa3   : > { %v413_v29 = vcombine.low %v408_v28, %v409_v26 }
  0xa5   : > { %v420_v31 = vrot.slane %v413_v29, %v419_v27 }
  0xa7   : > { %v422_v32 = vadd.f32 %v420_v31, %v410_v30 }
  0xa9   : > { %423 = vst [vmem:[#allocation2] sm:$0xf] %v422_v32 }
  0xb0   : > { %v542_v33 = vld.sshfl [vmem:[#allocation2] sm:$0x33 pattern:$0x76325410] }
  0xb1   : > { %v436_v34 = vcombine.high %v542_v33, %v542_v33  ;;  %v440_v35 = vsel %vm439_vm8, %v542_v33, 0.0 }
  0xb3   : > { %v441_v36 = vsel %vm439_vm8, %v436_v34, 0.0 }
  0xb4   : > { %v442_v37 = vadd.f32 %v441_v36, %v440_v35 }
  0xb6   : > { %443 = vadd.xlane.f32.xlu1 %v442_v37 }
 0x143   : > { %v444_v58 = vpop.xlane.xlu1 %443 }
 0x144   : > { %445 = vst [vmem:[%s229_s5] sm:$0x3] %v444_v58 }
 0x145 PF: > { %s13_s14 = sadd.s32 1, %s613_s14   ;;  %s761_s12 = smov %s609_s13 }
 0x146   : > { %p10_p5 = scmp.ge.s32.totalorder %s13_s14, 4   ;;  %s762_s13 = smov %s764_s15 }
 0x148   :  { %12 = sbr.rel (!%p10_p5) target bundleno = 2 (0x2), region = 73 }

</bundles_post_ra>
